<compile_context>
chip_gen: v7x
topology: tpu7x:2x2x1
jax: 0.10.0
libtpu: 0.0.40
codegen_flags: <defaults>
</compile_context>

<pallas_src>
import math

import jax
import jax.numpy as jnp
from jax import lax
from jax.experimental import pallas as pl
from jax.experimental.pallas import tpu as pltpu


M_TILE = 128  # MXU-friendly row tile for the input projection


def _round_up(x, m):
    return ((x + m - 1) // m) * m


def _nbytes(shape, dtype):
    n = 1
    for s in shape:
        n *= int(s)
    return n * jnp.dtype(dtype).itemsize


def _vmem_limit(block_bytes):
    # blocks may be double-buffered by the pipeline; add margin, stay sane.
    return int(min(max(2 * block_bytes + (4 << 20), 32 << 20), 100 << 20))


# ---------------------------------------------------------------------------
# Kernel 1: hoisted input projection
#   gx = sum_i x_i @ W_i + b   with all 8 gate blocks (2 dirs x i,f,g,o) fused
#   grid = (Mp / 128,) over M tiles of the flattened (T*B) row axis.
# ---------------------------------------------------------------------------
def _make_input_proj_kernel(n_in):
    def kernel(*refs):
        x_refs = refs[:n_in]
        w_refs = refs[n_in:2 * n_in]
        b_ref = refs[2 * n_in]
        o_ref = refs[2 * n_in + 1]
        acc = jnp.dot(x_refs[0][...].astype(w_refs[0].dtype), w_refs[0][...],
                      preferred_element_type=jnp.float32)
        for xr, wr in zip(x_refs[1:], w_refs[1:]):
            acc = acc + jnp.dot(xr[...].astype(wr.dtype), wr[...],
                                preferred_element_type=jnp.float32)
        o_ref[...] = (acc + b_ref[...]).astype(o_ref.dtype)
    return kernel


def input_projection(xs, ws, b, out_dtype):
    """xs: list of (Mp, Din_i); ws: list of (Din_i, 8H); b: (1, 8H) -> (Mp, 8H)."""
    n = len(xs)
    mp = int(xs[0].shape[0])
    h8 = int(ws[0].shape[1])
    in_specs = (
        [pl.BlockSpec((M_TILE, int(x.shape[1])), lambda m: (m, 0)) for x in xs]
        + [pl.BlockSpec((int(w.shape[0]), h8), lambda m: (0, 0)) for w in ws]
        + [pl.BlockSpec((1, h8), lambda m: (0, 0))]
    )
    block_bytes = (sum(_nbytes((M_TILE, x.shape[1]), x.dtype) for x in xs)
                   + sum(_nbytes(w.shape, w.dtype) for w in ws)
                   + _nbytes((1, h8), b.dtype)
                   + _nbytes((M_TILE, h8), out_dtype))
    return pl.pallas_call(
        _make_input_proj_kernel(n),
        out_shape=jax.ShapeDtypeStruct((mp, h8), out_dtype),
        grid_spec=pltpu.PrefetchScalarGridSpec(
            num_scalar_prefetch=0,
            grid=(mp // M_TILE,),
            in_specs=in_specs,
            out_specs=pl.BlockSpec((M_TILE, h8), lambda m: (m, 0))),
        compiler_params=pltpu.CompilerParams(
            dimension_semantics=("parallel",),
            vmem_limit_bytes=_vmem_limit(block_bytes)),
    )(*xs, *ws, b)


# ---------------------------------------------------------------------------
# Kernel 2: one bidirectional LSTM layer recurrence (both directions
#   interleaved in a single in-kernel fori_loop; trip count = max(lengths)).
#   Packed-sequence semantics: state updates masked with (t < length[b]).
# ---------------------------------------------------------------------------
def _bilstm_layer_kernel(maxlen_ref, lens_ref, gx_ref, whh_ref,
                         outf_ref, outb_ref, hfin_ref):
    tp, bsz, h8 = gx_ref.shape
    h = h8 // 8
    maxlen = maxlen_ref[0]
    lens = lens_ref[...]                    # (B, 1) int32
    cdt = whh_ref.dtype                     # matmul compute dtype

    # zero once: covers per-sequence padding, t >= maxlen, and the Mp pad rows
    outf_ref[...] = jnp.zeros_like(outf_ref)
    outb_ref[...] = jnp.zeros_like(outb_ref)

    def cell(gates, c):
        i = jax.nn.sigmoid(gates[:, 0 * h:1 * h])
        f = jax.nn.sigmoid(gates[:, 1 * h:2 * h])
        g = jnp.tanh(gates[:, 2 * h:3 * h])
        o = jax.nn.sigmoid(gates[:, 3 * h:4 * h])
        c_new = f * c + i * g
        h_new = o * jnp.tanh(c_new)
        return h_new, c_new

    def step(s, carry):
        h_f, c_f, h_b, c_b = carry
        t_f = s
        t_b = maxlen - 1 - s

        # ---- forward chain at time t_f (gate preacts in lanes [0, 4H)) ----
        g_f = gx_ref[t_f, :, 0:4 * h].astype(jnp.float32) + jnp.dot(
            h_f.astype(cdt), whh_ref[0], preferred_element_type=jnp.float32)
        hn_f, cn_f = cell(g_f, c_f)
        v_f = lens > t_f
        h_f = jnp.where(v_f, hn_f, h_f)
        c_f = jnp.where(v_f, cn_f, c_f)
        outf_ref[t_f] = jnp.where(v_f, hn_f, 0.0).astype(outf_ref.dtype)

        # ---- backward chain at time t_b (lanes [4H, 8H)); independent of the
        # forward chain, so the two chains' MXU/EUP latencies overlap ----
        g_b = gx_ref[t_b, :, 4 * h:8 * h].astype(jnp.float32) + jnp.dot(
            h_b.astype(cdt), whh_ref[1], preferred_element_type=jnp.float32)
        hn_b, cn_b = cell(g_b, c_b)
        v_b = lens > t_b
        h_b = jnp.where(v_b, hn_b, h_b)
        c_b = jnp.where(v_b, cn_b, c_b)
        outb_ref[t_b] = jnp.where(v_b, hn_b, 0.0).astype(outb_ref.dtype)

        return (h_f, c_f, h_b, c_b)

    z = jnp.zeros((bsz, h), jnp.float32)
    h_f, _, h_b, _ = lax.fori_loop(0, maxlen, step, (z, z, z, z))
    # final hidden written ONCE: [fwd | bwd] == cat(hidden[-2], hidden[-1])
    hfin_ref[...] = jnp.concatenate([h_f, h_b], axis=-1)


def bilstm_layer(gx, w_hh, lens, maxlen):
    """gx: (Tp, B, 8H); w_hh: (2, H, 4H); lens: (B,1) i32; maxlen: (1,) i32.
    Returns (out_fwd (Tp,B,H), out_bwd (Tp,B,H), final hidden (B, 2H) f32)."""
    tp, bsz, h8 = gx.shape
    h = h8 // 8
    out_dtype = gx.dtype
    block_bytes = (_nbytes(gx.shape, gx.dtype) + _nbytes(w_hh.shape, w_hh.dtype)
                   + 2 * _nbytes((tp, bsz, h), out_dtype)
                   + _nbytes((bsz, 2 * h), jnp.float32)
                   + _nbytes(lens.shape, lens.dtype))
    return pl.pallas_call(
        _bilstm_layer_kernel,
        out_shape=(jax.ShapeDtypeStruct((tp, bsz, h), out_dtype),
                   jax.ShapeDtypeStruct((tp, bsz, h), out_dtype),
                   jax.ShapeDtypeStruct((bsz, 2 * h), jnp.float32)),
        grid_spec=pltpu.PrefetchScalarGridSpec(
            num_scalar_prefetch=1,
            grid=(1,),
            in_specs=[
                pl.BlockSpec((bsz, 1), lambda i, ml: (0, 0)),
                pl.BlockSpec((tp, bsz, h8), lambda i, ml: (0, 0, 0)),
                pl.BlockSpec((2, h, 4 * h), lambda i, ml: (0, 0, 0)),
            ],
            out_specs=[
                pl.BlockSpec((tp, bsz, h), lambda i, ml: (0, 0, 0)),
                pl.BlockSpec((tp, bsz, h), lambda i, ml: (0, 0, 0)),
                pl.BlockSpec((bsz, 2 * h), lambda i, ml: (0, 0)),
            ],
        ),
        compiler_params=pltpu.CompilerParams(
            dimension_semantics=("arbitrary",),
            vmem_limit_bytes=_vmem_limit(block_bytes)),
    )(maxlen, lens, gx, w_hh)


# ---------------------------------------------------------------------------
# Full forward: embedding -> bi-LSTM stack -> concat final hiddens -> fc
# ---------------------------------------------------------------------------
def lstm_discr_forward(text_ids, text_lengths, params,
                       compute_dtype=jnp.float32):
    """text_ids: (T, B) int32; text_lengths: (B,) int32 -> (B, output_dim)."""
    T, B = text_ids.shape
    # embedding (+ eval-mode dropout identity); gather stays in plain XLA
    x = jnp.take(params["emb"], text_ids, axis=0)            # (T, B, E) f32

    lens = text_lengths.astype(jnp.int32).reshape(B, 1)
    maxlen = jnp.max(text_lengths).astype(jnp.int32).reshape(1)

    # pad the flattened (T*B) row axis to a multiple of both M_TILE and B so
    # (Mp, .) <-> (Tp, B, .) reshapes between kernels are free views.
    mult = (M_TILE * B) // math.gcd(M_TILE, B)
    mp = _round_up(T * B, mult)
    tp = mp // B

    x2 = x.reshape(T * B, x.shape[-1])
    if mp != T * B:
        x2 = jnp.pad(x2, ((0, mp - T * B), (0, 0)))
    xs = [x2]

    hfin = None
    for li, lp in enumerate(params["layers"]):
        H = lp["w_hh"].shape[1]
        w_ih = lp["w_ih"].astype(compute_dtype)               # (Din, 8H) fused dirs
        ws = [w_ih] if li == 0 else [w_ih[:H, :], w_ih[H:, :]]
        gx = input_projection(xs, ws, lp["b"], out_dtype=compute_dtype)  # (Mp, 8H)
        gx = gx.reshape(tp, B, 8 * H)                         # free view
        out_f, out_b, hfin = bilstm_layer(gx, lp["w_hh"].astype(compute_dtype),
                                          lens, maxlen)
        xs = [out_f.reshape(mp, H), out_b.reshape(mp, H)]     # free views
        # TODO(synk): training-mode inter-layer dropout not implemented (eval).

    # hidden = cat(hidden[-2], hidden[-1]); dropout eval identity; tiny fc in XLA
    return hfin @ params["fc_w_t"] + params["fc_b"]


# ---------------------------------------------------------------------------
# Deterministic parameter construction (PyTorch-style init, gate order i,f,g,o)
# ---------------------------------------------------------------------------
def init_params(key, vocab_size, embedding_dim, hidden_dim, output_dim,
                n_layers, pad_idx):
    H = hidden_dim
    k = 1.0 / jnp.sqrt(jnp.float32(H))

    def uni(key, shape, bound):
        return jax.random.uniform(key, shape, jnp.float32, -bound, bound)

    key, ke = jax.random.split(key)
    emb = jax.random.normal(ke, (vocab_size, embedding_dim), jnp.float32)
    emb = emb.at[pad_idx].set(0.0)                           # padding_idx row = 0

    layers = []
    for l in range(n_layers):
        din = embedding_dim if l == 0 else 2 * H
        w_ih_dirs, w_hh_dirs, b_dirs = [], [], []
        for _d in range(2):                                  # fwd, bwd
            key, k1, k2, k3, k4 = jax.random.split(key, 5)
            w_ih = uni(k1, (4 * H, din), k)                  # PyTorch (4H, Din)
            w_hh = uni(k2, (4 * H, H), k)
            b_ih = uni(k3, (4 * H,), k)
            b_hh = uni(k4, (4 * H,), k)
            w_ih_dirs.append(w_ih.T)                         # (Din, 4H) fused gates
            w_hh_dirs.append(w_hh.T)                         # (H, 4H)
            b_dirs.append(b_ih + b_hh)                       # folded bias
        layers.append({
            "w_ih": jnp.concatenate(w_ih_dirs, axis=1),      # (Din, 8H) both dirs
            "w_hh": jnp.stack(w_hh_dirs),                    # (2, H, 4H)
            "b": jnp.concatenate(b_dirs).reshape(1, 8 * H),  # (1, 8H)
        })

    key, kf1, kf2 = jax.random.split(key, 3)
    kfc = 1.0 / jnp.sqrt(jnp.float32(2 * H))
    fc_w = uni(kf1, (output_dim, 2 * H), kfc)
    fc_b = uni(kf2, (output_dim,), kfc)
    return {"emb": emb, "layers": layers,
            "fc_w_t": fc_w.T, "fc_b": fc_b.reshape(1, output_dim)}


# ---------------------------------------------------------------------------
# Pure-JAX reference (for numeric verification of the kernels)
# ---------------------------------------------------------------------------
def _lstm_dir_ref(gx, whh, lens, reverse):
    T, B, H4 = gx.shape
    H = H4 // 4

    def step(carry, inp):
        h, c = carry
        gx_t, t = inp
        gates = gx_t + h @ whh
        i = jax.nn.sigmoid(gates[:, 0 * H:1 * H])
        f = jax.nn.sigmoid(gates[:, 1 * H:2 * H])
        g = jnp.tanh(gates[:, 2 * H:3 * H])
        o = jax.nn.sigmoid(gates[:, 3 * H:4 * H])
        c_new = f * c + i * g
        h_new = o * jnp.tanh(c_new)
        valid = (lens > t)[:, None]
        h = jnp.where(valid, h_new, h)
        c = jnp.where(valid, c_new, c)
        return (h, c), jnp.where(valid, h_new, 0.0)

    init = (jnp.zeros((B, H), jnp.float32), jnp.zeros((B, H), jnp.float32))
    (h_fin, _), outs = lax.scan(step, init, (gx, jnp.arange(T)), reverse=reverse)
    return outs, h_fin


def reference_forward(text_ids, text_lengths, params):
    x = params["emb"][text_ids]
    lens = text_lengths.astype(jnp.int32)
    h_f = h_b = None
    for lp in params["layers"]:
        H4 = lp["w_hh"].shape[-1]
        w_f, w_b = lp["w_ih"][:, :H4], lp["w_ih"][:, H4:]
        b_f, b_b = lp["b"][:, :H4], lp["b"][:, H4:]
        gx_f = jnp.einsum("tbd,dg->tbg", x, w_f) + b_f
        gx_b = jnp.einsum("tbd,dg->tbg", x, w_b) + b_b
        out_f, h_f = _lstm_dir_ref(gx_f, lp["w_hh"][0], lens, reverse=False)
        out_b, h_b = _lstm_dir_ref(gx_b, lp["w_hh"][1], lens, reverse=True)
        x = jnp.concatenate([out_f, out_b], axis=-1)
    hidden = jnp.concatenate([h_f, h_b], axis=-1)
    return hidden @ params["fc_w_t"] + params["fc_b"]


# ---------------------------------------------------------------------------
if __name__ == "__main__":
    vocab_size, embedding_dim, hidden_dim, output_dim = 50, 16, 32, 4
    n_layers, pad_idx = 2, 0
    T, B = 8, 2

    key = jax.random.PRNGKey(0)
    key, kp, kt = jax.random.split(key, 3)
    params = init_params(kp, vocab_size, embedding_dim, hidden_dim, output_dim,
                         n_layers, pad_idx)

    # lengths sorted decreasing, like pack_padded_sequence expects
    text_lengths = jnp.array([8, 5], dtype=jnp.int32)
    ids = jax.random.randint(kt, (T, B), 1, vocab_size, dtype=jnp.int32)
    t_idx = jnp.arange(T)[:, None]
    text_ids = jnp.where(t_idx < text_lengths[None, :], ids, pad_idx)

    ref = reference_forward(text_ids, text_lengths, params)

    # f32 path (tight check vs f32 reference)
    out = jax.block_until_ready(lstm_discr_forward(text_ids, text_lengths, params))
    assert out.shape == (B, output_dim)
    assert jnp.allclose(out, ref, atol=1e-3, rtol=1e-3), "f32 mismatch vs reference"

    # bf16-matmul path (v6e/v7x recommendation); looser tolerance vs f32 reference
    out_bf16 = jax.block_until_ready(
        lstm_discr_forward(text_ids, text_lengths, params,
                           compute_dtype=jnp.bfloat16))
    assert out_bf16.shape == (B, output_dim)
    assert bool(jnp.all(jnp.isfinite(out_bf16)))
    assert jnp.allclose(out_bf16, ref, atol=5e-2, rtol=5e-2), "bf16 drift too large"

    print("KERNEL_OK")
</pallas_src>

<mosaic_0001>
module attributes {stable_mosaic.version = 11 : i64} {
  func.func @kernel(%arg0: i32, %arg1: memref<128x16xf32, #tpu.memory_space<vmem>>, %arg2: memref<16x256xf32, #tpu.memory_space<vmem>>, %arg3: memref<1x256xf32, #tpu.memory_space<vmem>>, %arg4: memref<128x256xf32, #tpu.memory_space<vmem>>) attributes {dimension_semantics = [#tpu.dimension_semantics<parallel>], iteration_bounds = array<i64: 1>, scalar_prefetch = 0 : i64, scratch_operands = 0 : i64, tpu.core_type = #tpu.core_type<tc>, window_params = [{transform_indices = @transform_0, window_bounds = array<i64: 128, 16>}, {pipeline_mode = #tpu.pipeline_mode<synchronous>, transform_indices = @transform_1, window_bounds = array<i64: 16, 256>}, {pipeline_mode = #tpu.pipeline_mode<synchronous>, transform_indices = @transform_2, window_bounds = array<i64: 1, 256>}, {transform_indices = @transform_3, window_bounds = array<i64: 128, 256>}]} {
    %c0 = arith.constant 0 : index
    %c0_0 = arith.constant 0 : index
    %0 = vector.load %arg1[%c0, %c0_0] : memref<128x16xf32, #tpu.memory_space<vmem>>, vector<128x16xf32>
    %c0_1 = arith.constant 0 : index
    %c0_2 = arith.constant 0 : index
    %1 = vector.load %arg2[%c0_1, %c0_2] : memref<16x256xf32, #tpu.memory_space<vmem>>, vector<16x256xf32>
    %cst = arith.constant dense<0.000000e+00> : vector<128x256xf32>
    %2 = tpu.matmul %0, %1, %cst {dimension_numbers = #tpu.dot_dimension_numbers<[1], [0], [0], [1], [0, 0, 1, 1], [], []>} : vector<128x16xf32>, vector<16x256xf32>, vector<128x256xf32> -> vector<128x256xf32>
    %c0_3 = arith.constant 0 : index
    %c0_4 = arith.constant 0 : index
    %3 = vector.load %arg3[%c0_3, %c0_4] : memref<1x256xf32, #tpu.memory_space<vmem>>, vector<1x256xf32>
    %4 = vector.broadcast %3 : vector<1x256xf32> to vector<128x256xf32>
    %5 = arith.addf %2, %4 : vector<128x256xf32>
    %c0_5 = arith.constant 0 : index
    %c0_6 = arith.constant 0 : index
    %6 = vector.load %arg4[%c0_5, %c0_6] : memref<128x256xf32, #tpu.memory_space<vmem>>, vector<128x256xf32>
    tpu.vector_store %arg4[%c0_5, %c0_6], %5 {strides = array<i32>} : memref<128x256xf32, #tpu.memory_space<vmem>>, vector<128x256xf32>,
    return
  }
  func.func @transform_0(%arg0: i32) -> (i32, i32) {
    %c0_i32 = arith.constant 0 : i32
    %c0_i32_0 = arith.constant 0 : i32
    return %arg0, %c0_i32 : i32, i32
  }
  func.func @transform_1(%arg0: i32) -> (i32, i32) {
    %c0_i32 = arith.constant 0 : i32
    %c0_i32_0 = arith.constant 0 : i32
    %c0_i32_1 = arith.constant 0 : i32
    return %c0_i32, %c0_i32_0 : i32, i32
  }
  func.func @transform_2(%arg0: i32) -> (i32, i32) {
    %c0_i32 = arith.constant 0 : i32
    %c0_i32_0 = arith.constant 0 : i32
    %c0_i32_1 = arith.constant 0 : i32
    return %c0_i32, %c0_i32_0 : i32, i32
  }
  func.func @transform_3(%arg0: i32) -> (i32, i32) {
    %c0_i32 = arith.constant 0 : i32
    %c0_i32_0 = arith.constant 0 : i32
    return %arg0, %c0_i32 : i32, i32
  }
}

</mosaic_0001>

<bundles_post_ra>
// kernel: tpu_custom_call.1
= control target key start
LH: loop header
LB: loop body
LE: loop exit
PB: predicated region body
PF: predicated region fallthrough
CT: control target
= control target key end

     0   :  { %v355_v5 = vmov 0.0   ;;  %vm47_vm0 = vcmask 130048   ;;  %s506_s0 = inlined_call_operand.vmem [shape: f32[128,16], index: 0, kind: input, shape index: {}]   ;;  %s507_s1 = inlined_call_operand.vmem [shape: f32[16,256], index: 1, kind: input, shape index: {}]   ;;  %s508_s2 = inlined_call_operand.vmem [shape: f32[1,256], index: 2, kind: input, shape index: {}]   ;;  %s509_s3 = inlined_call_operand.hbm [shape: f32[128,256], index: 3, kind: output, shape index: {}]  }
   0x1   :  { %v32_v0 = vld [vmem:[%s507_s1 + $0x8] sm:$0xff]  ;;  %v34_v1 = vld [vmem:[%s507_s1 + $0x18] sm:$0xff]  ;;  %v31_v2 = vld [vmem:[%s507_s1] sm:$0xff]  ;;  %160 = vmatprep.mubr.f32.mxu0 %v355_v5  ;;  %208 = vmatprep.mubr.f32.mxu1 %v355_v5 }
   0x2   :  { %v321_v3 = vpack.c.bf16 %v34_v1, %v32_v0  ;;  %v33_v4 = vld [vmem:[%s507_s1 + $0x10] sm:$0xff]  ;;  %v15_v7 = vld [vmem:[%s506_s0] sm:$0xff] }
   0x3   :  { %v323_v6 = vpack.c.bf16 %v33_v4, %v31_v2  ;;  %v23_v8 = vld [vmem:[%s506_s0 + $0x40] sm:$0xff] }
   0x4   :  { %322 = vmatprep.subr.bf16.mxu0 %v321_v3  ;;  %325 = vmatprep.subr.bf16.mxu1 %v321_v3 }
   0x5   :  { %324 = vmatpush1.bf16.msra.mxu0 %v323_v6  ;;  %326 = vmatpush1.bf16.msra.mxu1 %v323_v6 }
   0x8   :  { %305 = vmatmul.mubr.msk.f32.vlgmr.msra.gmra.mrb[0].mxu0 %vm47_vm0, %v15_v7  ;;  %313 = vmatmul.mubr.msk.f32.vlgmr.msra.gmra.mrb[0].mxu1 %vm47_vm0, %v23_v8 }
   0x9   :  { %8 = vsyncpa [#allocation3], 0  ;;  %166 = vmatprep.mubr.f32.mxu0 %v355_v5  ;;  %214 = vmatprep.mubr.f32.mxu1 %v355_v5  ;;  %v16_v9 = vld [vmem:[%s506_s0 + $0x8] sm:$0xff]  ;;  %v17_v11 = vld [vmem:[%s506_s0 + $0x10] sm:$0xff]  ;;  %v37_v23 = vlaneseq }
   0xa   :  { %v24_v10 = vld [vmem:[%s506_s0 + $0x48] sm:$0xff]  ;;  %v25_v12 = vld [vmem:[%s506_s0 + $0x50] sm:$0xff]  ;;  %v18_v13 = vld [vmem:[%s506_s0 + $0x18] sm:$0xff] }
   0xb   :  { %v26_v14 = vld [vmem:[%s506_s0 + $0x58] sm:$0xff]  ;;  %v19_v15 = vld [vmem:[%s506_s0 + $0x20] sm:$0xff]  ;;  %v20_v17 = vld [vmem:[%s506_s0 + $0x28] sm:$0xff]  ;;  %v38_v24 = vshrl.u32 %v37_v23, 7 }
   0xc   :  { %306 = vmatmul.mubr.msk.f32.gmra.mrb[2].mxu0 %vm47_vm0, %v16_v9  ;;  %314 = vmatmul.mubr.msk.f32.gmra.mrb[2].mxu1 %vm47_vm0, %v24_v10  ;;  %v27_v16 = vld [vmem:[%s506_s0 + $0x60] sm:$0xff]  ;;  %v28_v18 = vld [vmem:[%s506_s0 + $0x68] sm:$0xff]  ;;  %v21_v19 = vld [vmem:[%s506_s0 + $0x30] sm:$0xff] }
   0xd   :  { %172 = vmatprep.mubr.f32.mxu0 %v355_v5  ;;  %220 = vmatprep.mubr.f32.mxu1 %v355_v5  ;;  %v29_v20 = vld [vmem:[%s506_s0 + $0x70] sm:$0xff]  ;;  %v22_v21 = vld [vmem:[%s506_s0 + $0x38] sm:$0xff]  ;;  %v39_v25 = vsub.s32 0, %v38_v24  ;;  %v35_v26 = vld [vmem:[%s508_s2] sm:$0x3]  ;;  %v43_v27 = vsub.s32 1, %v38_v24 }
   0xe   :  { %v30_v22 = vld [vmem:[%s506_s0 + $0x78] sm:$0xff]  ;;  %s356_s0 = smov [#allocation2]  }
   0xf   :  { %v458_v28 = vrot.slane %v35_v26, %v39_v25  ;;  %v460_v29 = vrot.slane %v35_v26, %v43_v27  ;;  %s294_s2 = sshll.u32 %s356_s0, 4  ;;  %s295_s2 = int_to_ptr.vmem [resolvable:$true] %s294_s2 }
  0x10   :  { %307 = vmatmul.mubr.msk.f32.gmra.mrb[4].mxu0 %vm47_vm0, %v17_v11  ;;  %315 = vmatmul.mubr.msk.f32.gmra.mrb[4].mxu1 %vm47_vm0, %v25_v12  ;;  %s331_s25 = scalar_lea.vmem %s295_s2, 4096  ;;  %p336_p1 = scmp.lt.s32.totalorder %s295_s2, %s295_s2 }
  0x11   :  { %178 = vmatprep.mubr.f32.mxu0 %v355_v5  ;;  %226 = vmatprep.mubr.f32.mxu1 %v355_v5  ;;  %p332_p0 = scmp.ne.s32.totalorder %s295_s2, %s331_s25  ;;  %p337_p2 = scmp.lt.s32.totalorder %s331_s25, %s331_s25 }
  0x13   :  { %p338_p3 = por %p337_p2, %p336_p1 }
  0x14   :  { %308 = vmatmul.mubr.msk.f32.gmra.mrb[6].mxu0 %vm47_vm0, %v18_v13  ;;  %316 = vmatmul.mubr.msk.f32.gmra.mrb[6].mxu1 %vm47_vm0, %v26_v14 }
  0x15   :  { %184 = vmatprep.mubr.f32.mxu0 %v355_v5  ;;  %232 = vmatprep.mubr.f32.mxu1 %v355_v5  ;;  %p339_p4 = pnand %p338_p3, %p332_p0 }
  0x18   :  { %309 = vmatmul.mubr.msk.f32.gmra.mrb[8].mxu0 %vm47_vm0, %v19_v15  ;;  %317 = vmatmul.mubr.msk.f32.gmra.mrb[8].mxu1 %vm47_vm0, %v27_v16 }
  0x19   :  { %190 = vmatprep.mubr.f32.mxu0 %v355_v5  ;;  %238 = vmatprep.mubr.f32.mxu1 %v355_v5 }
  0x1c   :  { %310 = vmatmul.mubr.msk.f32.gmra.mrb[10].mxu0 %vm47_vm0, %v20_v17  ;;  %318 = vmatmul.mubr.msk.f32.gmra.mrb[10].mxu1 %vm47_vm0, %v28_v18 }
  0x1d   :  { %196 = vmatprep.mubr.f32.mxu0 %v355_v5  ;;  %244 = vmatprep.mubr.f32.mxu1 %v355_v5 }
  0x20   :  { %311 = vmatmul.mubr.msk.f32.gmra.mrb[12].mxu0 %vm47_vm0, %v21_v19  ;;  %319 = vmatmul.mubr.msk.f32.gmra.mrb[12].mxu1 %vm47_vm0, %v29_v20 }
  0x21   :  { %202 = vmatprep.mubr.f32.mxu0 %v355_v5  ;;  %250 = vmatprep.mubr.f32.mxu1 %v355_v5 }
  0x24   :  { %312 = vmatmul.mubr.msk.f32.gmra.mrb[14].mxu0 %vm47_vm0, %v22_v21  ;;  %320 = vmatmul.mubr.msk.f32.gmra.mrb[14].mxu1 %vm47_vm0, %v30_v22 }
  0xdb   :  { %v162_v30 = vpop.f32.mrb[0].mxu0  ;;  %v210_v31 = vpop.f32.mrb[0].mxu1 }
  0xdc   :  { %v163_v32 = vadd.f32 %v162_v30, %v458_v28  ;;  %v211_v33 = vadd.f32 %v210_v31, %v458_v28  ;;  %v164_v34 = vpop.f32.mrb[1].mxu0  ;;  %v212_v35 = vpop.f32.mrb[1].mxu1 }
  0xdd   :  { %v165_v36 = vadd.f32 %v164_v34, %v460_v29  ;;  %v213_v37 = vadd.f32 %v212_v35, %v460_v29 }
  0xde   :  { %257 = vst [vmem:[#allocation2] sm:$0xff] %v163_v32  ;;  %273 = vst [vmem:[#allocation2 + $0x80] sm:$0xff] %v211_v33 }
  0xdf   :  { %258 = vst [vmem:[#allocation2 + $0x8] sm:$0xff] %v165_v36  ;;  %274 = vst [vmem:[#allocation2 + $0x88] sm:$0xff] %v213_v37  ;;  %v168_v38 = vpop.f32.mrb[2].mxu0  ;;  %v216_v39 = vpop.f32.mrb[2].mxu1 }
  0xe0   :  { %v169_v40 = vadd.f32 %v168_v38, %v458_v28  ;;  %v217_v41 = vadd.f32 %v216_v39, %v458_v28  ;;  %v170_v42 = vpop.f32.mrb[3].mxu0  ;;  %v218_v43 = vpop.f32.mrb[3].mxu1 }
  0xe1   :  { %v171_v44 = vadd.f32 %v170_v42, %v460_v29  ;;  %v219_v45 = vadd.f32 %v218_v43, %v460_v29 }
  0xe2   :  { %259 = vst [vmem:[#allocation2 + $0x10] sm:$0xff] %v169_v40  ;;  %275 = vst [vmem:[#allocation2 + $0x90] sm:$0xff] %v217_v41 }
  0xe3   :  { %260 = vst [vmem:[#allocation2 + $0x18] sm:$0xff] %v171_v44  ;;  %276 = vst [vmem:[#allocation2 + $0x98] sm:$0xff] %v219_v45  ;;  %v174_v46 = vpop.f32.mrb[4].mxu0  ;;  %v222_v47 = vpop.f32.mrb[4].mxu1 }
  0xe4   :  { %v175_v48 = vadd.f32 %v174_v46, %v458_v28  ;;  %v223_v49 = vadd.f32 %v222_v47, %v458_v28  ;;  %v176_v50 = vpop.f32.mrb[5].mxu0  ;;  %v224_v51 = vpop.f32.mrb[5].mxu1 }
  0xe5   :  { %v177_v52 = vadd.f32 %v176_v50, %v460_v29  ;;  %v225_v53 = vadd.f32 %v224_v51, %v460_v29 }
  0xe6   :  { %261 = vst [vmem:[#allocation2 + $0x20] sm:$0xff] %v175_v48  ;;  %277 = vst [vmem:[#allocation2 + $0xa0] sm:$0xff] %v223_v49 }
  0xe7   :  { %262 = vst [vmem:[#allocation2 + $0x28] sm:$0xff] %v177_v52  ;;  %278 = vst [vmem:[#allocation2 + $0xa8] sm:$0xff] %v225_v53  ;;  %v180_v54 = vpop.f32.mrb[6].mxu0  ;;  %v228_v55 = vpop.f32.mrb[6].mxu1 }
  0xe8   :  { %v181_v56 = vadd.f32 %v180_v54, %v458_v28  ;;  %v229_v57 = vadd.f32 %v228_v55, %v458_v28  ;;  %v182_v58 = vpop.f32.mrb[7].mxu0  ;;  %v230_v59 = vpop.f32.mrb[7].mxu1 }
  0xe9   :  { %v183_v60 = vadd.f32 %v182_v58, %v460_v29  ;;  %v231_v61 = vadd.f32 %v230_v59, %v460_v29 }
  0xea   :  { %263 = vst [vmem:[#allocation2 + $0x30] sm:$0xff] %v181_v56  ;;  %279 = vst [vmem:[#allocation2 + $0xb0] sm:$0xff] %v229_v57 }
  0xeb   :  { %264 = vst [vmem:[#allocation2 + $0x38] sm:$0xff] %v183_v60  ;;  %280 = vst [vmem:[#allocation2 + $0xb8] sm:$0xff] %v231_v61  ;;  %v186_v62 = vpop.f32.mrb[8].mxu0  ;;  %v234_v63 = vpop.f32.mrb[8].mxu1 }
  0xec   :  { %v187_v0 = vadd.f32 %v186_v62, %v458_v28  ;;  %v235_v1 = vadd.f32 %v234_v63, %v458_v28  ;;  %v188_v2 = vpop.f32.mrb[9].mxu0  ;;  %v236_v3 = vpop.f32.mrb[9].mxu1 }
  0xed   :  { %v189_v4 = vadd.f32 %v188_v2, %v460_v29  ;;  %v237_v5 = vadd.f32 %v236_v3, %v460_v29 }
  0xee   :  { %265 = vst [vmem:[#allocation2 + $0x40] sm:$0xff] %v187_v0  ;;  %281 = vst [vmem:[#allocation2 + $0xc0] sm:$0xff] %v235_v1 }
  0xef   :  { %266 = vst [vmem:[#allocation2 + $0x48] sm:$0xff] %v189_v4  ;;  %282 = vst [vmem:[#allocation2 + $0xc8] sm:$0xff] %v237_v5  ;;  %v192_v6 = vpop.f32.mrb[10].mxu0  ;;  %v240_v7 = vpop.f32.mrb[10].mxu1 }
  0xf0   :  { %v193_v8 = vadd.f32 %v192_v6, %v458_v28  ;;  %v241_v9 = vadd.f32 %v240_v7, %v458_v28  ;;  %v194_v10 = vpop.f32.mrb[11].mxu0  ;;  %v242_v11 = vpop.f32.mrb[11].mxu1 }
  0xf1   :  { %v195_v12 = vadd.f32 %v194_v10, %v460_v29  ;;  %v243_v13 = vadd.f32 %v242_v11, %v460_v29 }
  0xf2   :  { %267 = vst [vmem:[#allocation2 + $0x50] sm:$0xff] %v193_v8  ;;  %283 = vst [vmem:[#allocation2 + $0xd0] sm:$0xff] %v241_v9 }
  0xf3   :  { %268 = vst [vmem:[#allocation2 + $0x58] sm:$0xff] %v195_v12  ;;  %284 = vst [vmem:[#allocation2 + $0xd8] sm:$0xff] %v243_v13  ;;  %v198_v14 = vpop.f32.mrb[12].mxu0  ;;  %v246_v15 = vpop.f32.mrb[12].mxu1 }
  0xf4   :  { %v199_v16 = vadd.f32 %v198_v14, %v458_v28  ;;  %v247_v17 = vadd.f32 %v246_v15, %v458_v28  ;;  %v200_v18 = vpop.f32.mrb[13].mxu0  ;;  %v248_v19 = vpop.f32.mrb[13].mxu1 }
  0xf5   :  { %v201_v20 = vadd.f32 %v200_v18, %v460_v29  ;;  %v249_v21 = vadd.f32 %v248_v19, %v460_v29 }
  0xf6   :  { %269 = vst [vmem:[#allocation2 + $0x60] sm:$0xff] %v199_v16  ;;  %285 = vst [vmem:[#allocation2 + $0xe0] sm:$0xff] %v247_v17 }
  0xf7   :  { %270 = vst [vmem:[#allocation2 + $0x68] sm:$0xff] %v201_v20  ;;  %286 = vst [vmem:[#allocation2 + $0xe8] sm:$0xff] %v249_v21  ;;  %v204_v22 = vpop.f32.mrb[14].mxu0  ;;  %v252_v23 = vpop.f32.mrb[14].mxu1 }
  0xf8   :  { %v205_v24 = vadd.f32 %v204_v22, %v458_v28  ;;  %v253_v25 = vadd.f32 %v252_v23, %v458_v28  ;;  %v206_v26 = vpop.f32.mrb[15].mxu0  ;;  %v254_v27 = vpop.f32.mrb[15].mxu1 }
  0xf9   :  { %v207_v30 = vadd.f32 %v206_v26, %v460_v29  ;;  %v255_v31 = vadd.f32 %v254_v27, %v460_v29 }
  0xfa   :  { %271 = vst [vmem:[#allocation2 + $0x70] sm:$0xff] %v205_v24  ;;  %287 = vst [vmem:[#allocation2 + $0xf0] sm:$0xff] %v253_v25 }
  0xfb   :  { %272 = vst [vmem:[#allocation2 + $0x78] sm:$0xff] %v207_v30  ;;  %288 = vst [vmem:[#allocation2 + $0xf8] sm:$0xff] %v255_v31 }
  0xfc   :  { %342 = shalt.err (!%p339_p4)
}
  0xfd   :  { %s343_s28 = scalar_lea.hbm %s509_s3, 4096 }
  0xfe   :  { %p344_p5 = scmp.ne.s32.totalorder %s509_s3, %s343_s28  ;;  %p347_p6 = scmp.lt.u32.totalorder %s343_s28, %s509_s3 }
 0x100   :  { %p349_p7 = pnand %p347_p6, %p344_p5 }
 0x102   :  { %352 = shalt.err (!%p349_p7)
}
 0x103   :  { %s357_s6 = smov 256   ;;  %s358_s7 = smov 16  }
 0x104   :  { %300 = dma.vmem_to_hbm [thread:$0]  %s295_s2, 4096, %s509_s3, [#allocation3], %s357_s6, %s357_s6, %s358_s7  }
 0x105   :  { %353 = dma.done.wait [#allocation3], 4096  }
 0x106   :  { %354 = vsyncadd [#allocation3], 4294963200 }
 0x107   :  { %304 = vsyncpa [#allocation3], 1 }

</bundles_post_ra>
